<compile_context>
chip_gen: v6e
topology: v6e:2x2x1
jax: 0.10.0
libtpu: 0.0.40
codegen_flags: <defaults>
</compile_context>

<pallas_src>
import jax
import jax.numpy as jnp
from jax.experimental import pallas as pl
from jax.experimental.pallas import tpu as pltpu


# --------------------------------------------------------------------------- #
# Host-side prep: fold Conv2d(2, 1, 7, stride=1, pad=3) into a dense
# (2*H*W, H*W) matrix so the kernel does a single MXU matmul:
#     att_flat = concat([avg_flat, max_flat], axis=-1) @ M
# M[c*HW + ih*W + iw, oh*W + ow] = ws[c, ih-oh+3, iw-ow+3]  (0 where the tap
# falls outside the 7x7 window, i.e. where zero-padding applies).
# Recomputed only when conv weights change in a real model.
# --------------------------------------------------------------------------- #
def build_spatial_conv_matrix(ws, H, W):
    """ws: (2, 7, 7) conv taps (input channel 0 = avg map, 1 = max map)."""
    ws = jnp.asarray(ws, jnp.float32)
    dh = jnp.arange(H)[:, None] - jnp.arange(H)[None, :] + 3   # (H_in, H_out)
    dw = jnp.arange(W)[:, None] - jnp.arange(W)[None, :] + 3   # (W_in, W_out)
    okh = (dh >= 0) & (dh < 7)
    okw = (dw >= 0) & (dw < 7)
    dh_c = jnp.clip(dh, 0, 6)
    dw_c = jnp.clip(dw, 0, 6)
    # taps[c, ih, iw, oh, ow] = ws[c, ih-oh+3, iw-ow+3]
    taps = ws[:, dh_c[:, None, :, None], dw_c[None, :, None, :]]          # (2,H,W,H,W)
    mask = (okh[:, None, :, None] & okw[None, :, None, :]).astype(jnp.float32)
    return (taps * mask[None]).reshape(2 * H * W, H * W)                  # (2*HW, HW)


# --------------------------------------------------------------------------- #
# Kernel: one grid step processes `block_n` images, each stored lane-dense as
# (C, H*W).  Channel attention, channel scaling, spatial attention and the
# final product all happen in VMEM; the only matmuls are the folded channel FC
# and the conv-as-matmul, both on the MXU.
# --------------------------------------------------------------------------- #
def cbam_kernel(x_ref, wcc_ref, bcc_ref, m_ref, bs_ref, o_ref):
    x = x_ref[...].astype(jnp.float32)            # (Nb, C, HW)
    Nb, C, HW = x.shape

    # ----- channel attention: pool -> folded linear MLP -> sigmoid -----
    # fc has no nonlinearity between the two 1x1 convs (matches the module), so
    # fc(max_pool) + fc(avg_pool) == (max_pool + avg_pool) @ Wcc + bcc.
    mx = jnp.max(x, axis=2)                       # (Nb, C)  lane reductions
    av = jnp.sum(x, axis=2) * (1.0 / HW)          # (Nb, C)
    y = jnp.dot(mx + av, wcc_ref[...], preferred_element_type=jnp.float32) + bcc_ref[...]
    ch = jax.nn.sigmoid(y)                        # (Nb, C)

    xc = x * ch[:, :, None]                       # (Nb, C, HW) channel-scaled features

    # ----- spatial attention: channel max/mean -> 7x7 conv (one matmul) -> relu -----
    # NOTE: the C-axis reductions are cross-sublane (XLU); if a bundle dump shows XLU
    # binding at large block_n, the sum could be moved to the MXU via a ones(C) vector.
    smax = jnp.max(xc, axis=1)                    # (Nb, HW)
    savg = jnp.sum(xc, axis=1) * (1.0 / C)        # (Nb, HW)
    conv_in = jnp.concatenate([savg, smax], axis=1)            # (Nb, 2*HW) lane concat
    att = jnp.dot(conv_in, m_ref[...], preferred_element_type=jnp.float32) + bs_ref[0]
    att = jnp.maximum(att, 0.0)                   # (Nb, HW)  relu spatial gate

    o_ref[...] = (xc * att[:, None, :]).astype(o_ref.dtype)


def _pick_block_n(N, bytes_per_image, *, cap=128, vmem_budget=32 << 20):
    """Largest divisor of N that is <= cap and fits the tile budget.

    Per image we keep an input tile and an output tile, each double-buffered
    (4x), inside `vmem_budget` (intermediates / conv matrix handled via the
    overall vmem_limit_bytes headroom).
    """
    by_vmem = max(1, vmem_budget // (4 * bytes_per_image))
    bn = max(1, min(cap, by_vmem, N))
    while N % bn:
        bn -= 1
    return bn


def cbam_pallas(x, w1, b1, w2, b2, ws, bs, *, block_n=None, io_dtype=None):
    """CBAM forward.

    x : (N, C, H, W) float32
    w1: (T, C)  first 1x1 conv weight (T = C // ratio),  b1: (T,)
    w2: (C, T)  second 1x1 conv weight,                  b2: (C,)
    ws: (2, 7, 7) spatial-attention conv taps,           bs: (1,)
    io_dtype: optional dtype for the activation I/O at the pallas_call boundary
              (e.g. jnp.bfloat16 halves HBM traffic; compute stays f32 in-kernel).
    """
    N, C, H, W = x.shape
    HW = H * W

    w1 = jnp.asarray(w1, jnp.float32)
    b1 = jnp.asarray(b1, jnp.float32)
    w2 = jnp.asarray(w2, jnp.float32)
    b2 = jnp.asarray(b2, jnp.float32)
    hp = jax.lax.Precision.HIGHEST

    # Fold the linear channel MLP: fc(v) = v @ (W1^T W2^T) + (b1 @ W2^T + b2);
    # applied to both pooled stats and summed -> single (C, C) matmul in-kernel.
    wcc = jnp.dot(w1.T, w2.T, precision=hp)                       # (C, C)
    bcc = (2.0 * (jnp.dot(b1, w2.T, precision=hp) + b2)).reshape(1, C)

    M = build_spatial_conv_matrix(ws, H, W)                       # (2*HW, HW) f32
    bsr = jnp.asarray(bs, jnp.float32).reshape(-1)                # (1,) scalar in SMEM

    io_dtype = x.dtype if io_dtype is None else jnp.dtype(io_dtype)
    xf = x.reshape(N, C, HW).astype(io_dtype)                     # lane-dense last dim

    bytes_per_image = C * HW * jnp.dtype(io_dtype).itemsize
    if block_n is None:
        block_n = _pick_block_n(N, bytes_per_image)
    assert N % block_n == 0, (N, block_n)

    # VMEM need: double-buffered in/out tiles + conv matrix + f32 intermediates + slack.
    vmem_need = (4 * block_n * bytes_per_image          # in + out tiles, double-buffered
                 + M.size * 4                           # folded conv matrix
                 + 3 * block_n * C * HW * 4             # x/xc/out f32 intermediates
                 + (2 << 20))                           # weights, vregs, slack
    # 48 MiB cap keeps headroom on v7x (64 MiB physical) and is well under v5e/v6e's 128 MiB.
    vmem_limit = int(min(max(vmem_need, 16 << 20), 48 << 20))

    out = pl.pallas_call(
        cbam_kernel,
        out_shape=jax.ShapeDtypeStruct((N, C, HW), io_dtype),
        grid=(N // block_n,),
        in_specs=[
            pl.BlockSpec((block_n, C, HW), lambda n: (n, 0, 0)),       # activations
            pl.BlockSpec(memory_space=pltpu.MemorySpace.VMEM),         # Wcc (C, C)
            pl.BlockSpec(memory_space=pltpu.MemorySpace.VMEM),         # bcc (1, C)
            pl.BlockSpec(memory_space=pltpu.MemorySpace.VMEM),         # conv matrix M
            pl.BlockSpec(memory_space=pltpu.MemorySpace.SMEM),         # conv bias (1,)
        ],
        out_specs=pl.BlockSpec((block_n, C, HW), lambda n: (n, 0, 0)),
        # batch axis is independent -> parallel (shards across TCs when grid >= 2)
        compiler_params=pltpu.CompilerParams(
            dimension_semantics=("parallel",),
            vmem_limit_bytes=vmem_limit,
        ),
    )(xf, wcc, bcc, M, bsr)

    return out.reshape(N, C, H, W).astype(x.dtype)


# --------------------------------------------------------------------------- #
# Pure-JAX reference mirroring the PyTorch CBAM forward exactly
# (linear channel MLP, relu spatial gate — as in the module spec).
# --------------------------------------------------------------------------- #
def cbam_ref(x, w1, b1, w2, b2, ws, bs):
    hp = jax.lax.Precision.HIGHEST
    mx = jnp.max(x, axis=(2, 3))                       # (N, C)
    av = jnp.mean(x, axis=(2, 3))                      # (N, C)

    def fc(v):
        h = jnp.dot(v, w1.T, precision=hp) + b1
        return jnp.dot(h, w2.T, precision=hp) + b2

    ch = jax.nn.sigmoid(fc(mx) + fc(av))               # (N, C)
    xc = x * ch[:, :, None, None]
    smax = jnp.max(xc, axis=1)                         # (N, H, W)
    savg = jnp.mean(xc, axis=1)
    att_in = jnp.stack([savg, smax], axis=1)           # (N, 2, H, W)  [avg, max]
    att = jax.lax.conv_general_dilated(
        att_in, ws.reshape(1, 2, 7, 7), window_strides=(1, 1),
        padding=((3, 3), (3, 3)),
        dimension_numbers=("NCHW", "OIHW", "NCHW"), precision=hp)
    att = jnp.maximum(att + bs[0], 0.0)                # (N, 1, H, W)
    return xc * att


if __name__ == "__main__":
    # CBAM(in_chs=32, ratio=16) -> temp_chs = 2
    N, C, H, W = 2, 32, 16, 16
    ratio = 16
    T = C // ratio

    key = jax.random.PRNGKey(0)
    ks = jax.random.split(key, 7)
    x = jax.random.normal(ks[0], (N, C, H, W), jnp.float32)
    w1 = jax.random.normal(ks[1], (T, C), jnp.float32) * 0.2     # Conv2d(C, T, 1)
    b1 = jax.random.normal(ks[2], (T,), jnp.float32) * 0.1
    w2 = jax.random.normal(ks[3], (C, T), jnp.float32) * 0.2     # Conv2d(T, C, 1)
    b2 = jax.random.normal(ks[4], (C,), jnp.float32) * 0.1
    ws = jax.random.normal(ks[5], (2, 7, 7), jnp.float32) * 0.1  # Conv2d(2, 1, 7, p=3)
    bs = jax.random.normal(ks[6], (1,), jnp.float32) * 0.1

    out = jax.block_until_ready(cbam_pallas(x, w1, b1, w2, b2, ws, bs))
    ref = cbam_ref(x, w1, b1, w2, b2, ws, bs)

    assert out.shape == (N, C, H, W)
    err = float(jnp.max(jnp.abs(out - ref)))
    assert jnp.allclose(out, ref, rtol=1e-4, atol=1e-4), err
    print("KERNEL_OK")
</pallas_src>

<mosaic_0001>
module attributes {stable_mosaic.version = 11 : i64} {
  func.func @cbam_kernel(%arg0: i32, %arg1: memref<2x32x256xf32, #tpu.memory_space<vmem>>, %arg2: memref<32x32xf32, #tpu.memory_space<vmem>>, %arg3: memref<1x32xf32, #tpu.memory_space<vmem>>, %arg4: memref<512x256xf32, #tpu.memory_space<vmem>>, %arg5: memref<1xf32, #tpu.memory_space<smem>>, %arg6: memref<2x32x256xf32, #tpu.memory_space<vmem>>) attributes {dimension_semantics = [#tpu.dimension_semantics<parallel>], iteration_bounds = array<i64: 1>, scalar_prefetch = 0 : i64, scratch_operands = 0 : i64, tpu.core_type = #tpu.core_type<tc>, window_params = [{transform_indices = @transform_0, window_bounds = array<i64: 2, 32, 256>}, {pipeline_mode = #tpu.pipeline_mode<synchronous>, transform_indices = @transform_1, window_bounds = array<i64: 32, 32>}, {pipeline_mode = #tpu.pipeline_mode<synchronous>, transform_indices = @transform_2, window_bounds = array<i64: 1, 32>}, {pipeline_mode = #tpu.pipeline_mode<synchronous>, transform_indices = @transform_3, window_bounds = array<i64: 512, 256>}, {transform_indices = @transform_4, window_bounds = array<i64: 1>}, {transform_indices = @transform_5, window_bounds = array<i64: 2, 32, 256>}]} {
    %c0 = arith.constant 0 : index
    %c0_0 = arith.constant 0 : index
    %c0_1 = arith.constant 0 : index
    %0 = vector.load %arg1[%c0, %c0_0, %c0_1] : memref<2x32x256xf32, #tpu.memory_space<vmem>>, vector<2x32x256xf32>
    %cst = arith.constant dense<0xFF800000> : vector<2x32xf32>
    %1 = vector.multi_reduction <maximumf>, %0, %cst [2] : vector<2x32x256xf32> to vector<2x32xf32>
    %cst_2 = arith.constant dense<0.000000e+00> : vector<2x32xf32>
    %2 = vector.multi_reduction <add>, %0, %cst_2 [2] : vector<2x32x256xf32> to vector<2x32xf32>
    %cst_3 = arith.constant 3.906250e-03 : f32
    %3 = vector.broadcast %cst_3 : f32 to vector<2x32xf32>
    %4 = arith.mulf %2, %3 : vector<2x32xf32>
    %5 = arith.addf %1, %4 : vector<2x32xf32>
    %c0_4 = arith.constant 0 : index
    %c0_5 = arith.constant 0 : index
    %6 = vector.load %arg2[%c0_4, %c0_5] : memref<32x32xf32, #tpu.memory_space<vmem>>, vector<32x32xf32>
    %cst_6 = arith.constant dense<0.000000e+00> : vector<2x32xf32>
    %7 = tpu.matmul %5, %6, %cst_6 {dimension_numbers = #tpu.dot_dimension_numbers<[1], [0], [0], [1], [0, 0, 1, 1], [], []>} : vector<2x32xf32>, vector<32x32xf32>, vector<2x32xf32> -> vector<2x32xf32>
    %c0_7 = arith.constant 0 : index
    %c0_8 = arith.constant 0 : index
    %8 = vector.load %arg3[%c0_7, %c0_8] : memref<1x32xf32, #tpu.memory_space<vmem>>, vector<1x32xf32>
    %9 = vector.broadcast %8 : vector<1x32xf32> to vector<2x32xf32>
    %10 = arith.addf %7, %9 : vector<2x32xf32>
    %11 = arith.negf %10 : vector<2x32xf32>
    %12 = math.exp %11 : vector<2x32xf32>
    %cst_9 = arith.constant 1.000000e+00 : f32
    %13 = vector.broadcast %cst_9 : f32 to vector<2x32xf32>
    %14 = arith.addf %13, %12 : vector<2x32xf32>
    %15 = arith.divf %13, %14 : vector<2x32xf32>
    %16 = vector.shape_cast %15 : vector<2x32xf32> to vector<2x32x1xf32>
    %17 = vector.broadcast %16 : vector<2x32x1xf32> to vector<2x32x256xf32>
    %18 = arith.mulf %0, %17 : vector<2x32x256xf32>
    %cst_10 = arith.constant dense<0xFF800000> : vector<2x256xf32>
    %19 = vector.multi_reduction <maximumf>, %18, %cst_10 [1] : vector<2x32x256xf32> to vector<2x256xf32>
    %cst_11 = arith.constant dense<0.000000e+00> : vector<2x256xf32>
    %20 = vector.multi_reduction <add>, %18, %cst_11 [1] : vector<2x32x256xf32> to vector<2x256xf32>
    %cst_12 = arith.constant 3.125000e-02 : f32
    %21 = vector.broadcast %cst_12 : f32 to vector<2x256xf32>
    %22 = arith.mulf %20, %21 : vector<2x256xf32>
    %23 = tpu.concatenate %22, %19 in 1 : vector<2x256xf32>, vector<2x256xf32> -> vector<2x512xf32>
    %c0_13 = arith.constant 0 : index
    %c0_14 = arith.constant 0 : index
    %24 = vector.load %arg4[%c0_13, %c0_14] : memref<512x256xf32, #tpu.memory_space<vmem>>, vector<512x256xf32>
    %cst_15 = arith.constant dense<0.000000e+00> : vector<2x256xf32>
    %25 = tpu.matmul %23, %24, %cst_15 {dimension_numbers = #tpu.dot_dimension_numbers<[1], [0], [0], [1], [0, 0, 1, 1], [], []>} : vector<2x512xf32>, vector<512x256xf32>, vector<2x256xf32> -> vector<2x256xf32>
    %c0_16 = arith.constant 0 : index
    %26 = memref.load %arg5[%c0_16] : memref<1xf32, #tpu.memory_space<smem>>
    %27 = vector.broadcast %26 : f32 to vector<2x256xf32>
    %28 = arith.addf %25, %27 : vector<2x256xf32>
    %cst_17 = arith.constant 0.000000e+00 : f32
    %29 = vector.broadcast %cst_17 : f32 to vector<2x256xf32>
    %30 = arith.maximumf %28, %29 : vector<2x256xf32>
    %31 = vector.shape_cast %30 : vector<2x256xf32> to vector<2x1x256xf32>
    %32 = vector.broadcast %31 : vector<2x1x256xf32> to vector<2x32x256xf32>
    %33 = arith.mulf %18, %32 : vector<2x32x256xf32>
    %c0_18 = arith.constant 0 : index
    %c0_19 = arith.constant 0 : index
    %c0_20 = arith.constant 0 : index
    %34 = vector.load %arg6[%c0_18, %c0_19, %c0_20] : memref<2x32x256xf32, #tpu.memory_space<vmem>>, vector<2x32x256xf32>
    tpu.vector_store %arg6[%c0_18, %c0_19, %c0_20], %33 {strides = array<i32>} : memref<2x32x256xf32, #tpu.memory_space<vmem>>, vector<2x32x256xf32>,
    return
  }
  func.func @transform_0(%arg0: i32) -> (i32, i32, i32) {
    %c0_i32 = arith.constant 0 : i32
    %c0_i32_0 = arith.constant 0 : i32
    %c0_i32_1 = arith.constant 0 : i32
    return %arg0, %c0_i32, %c0_i32_0 : i32, i32, i32
  }
  func.func @transform_1(%arg0: i32) -> (i32, i32) {
    %c0_i32 = arith.constant 0 : i32
    %c0_i32_0 = arith.constant 0 : i32
    %c0_i32_1 = arith.constant 0 : i32
    return %c0_i32, %c0_i32_0 : i32, i32
  }
  func.func @transform_2(%arg0: i32) -> (i32, i32) {
    %c0_i32 = arith.constant 0 : i32
    %c0_i32_0 = arith.constant 0 : i32
    %c0_i32_1 = arith.constant 0 : i32
    return %c0_i32, %c0_i32_0 : i32, i32
  }
  func.func @transform_3(%arg0: i32) -> (i32, i32) {
    %c0_i32 = arith.constant 0 : i32
    %c0_i32_0 = arith.constant 0 : i32
    %c0_i32_1 = arith.constant 0 : i32
    return %c0_i32, %c0_i32_0 : i32, i32
  }
  func.func @transform_4(%arg0: i32) -> i32 {
    %c0_i32 = arith.constant 0 : i32
    %c0_i32_0 = arith.constant 0 : i32
    return %c0_i32 : i32
  }
  func.func @transform_5(%arg0: i32) -> (i32, i32, i32) {
    %c0_i32 = arith.constant 0 : i32
    %c0_i32_0 = arith.constant 0 : i32
    %c0_i32_1 = arith.constant 0 : i32
    return %arg0, %c0_i32, %c0_i32_0 : i32, i32, i32
  }
}

</mosaic_0001>

<bundles_post_ra>
// kernel: tpu_custom_call.1
= control target key start
LH: loop header
LB: loop body
LE: loop exit
PB: predicated region body
PF: predicated region fallthrough
CT: control target
= control target key end

     0   :  { %11 = vsyncpa [#allocation4], 0  ;;  %s1176_s0 = inlined_call_operand.hbm [shape: f32[2,32,256], index: 0, kind: input, shape index: {}]   ;;  %s1177_s1 = inlined_call_operand.hbm [shape: f32[32,32], index: 1, kind: input, shape index: {}]   ;;  %s1178_s2 = inlined_call_operand.vmem [shape: f32[1,32], index: 2, kind: input, shape index: {}]   ;;  %s1179_s3 = inlined_call_operand.hbm [shape: f32[512,256], index: 3, kind: input, shape index: {}]   ;;  %s1180_s4 = inlined_call_operand.<no memory space> [shape: f32[1], index: 4, kind: input, shape index: {}]   ;;  %s1181_s5 = inlined_call_operand.hbm [shape: f32[2,32,256], index: 5, kind: output, shape index: {}]  }
   0x1   :  { %12 = vsyncpa [#allocation7], 0 }
   0x2   :  { %13 = vsyncpa [#allocation5], 0  ;;  %s924_s18 = smov [#allocation6]  }
   0x3   :  { %s31_s19 = sshll.u32 %s924_s18, 4  ;;  %s32_s19 = int_to_ptr.vmem [resolvable:$true] %s31_s19 }
   0x4   :  { %s846_s20 = scalar_lea.vmem %s32_s19, 512  ;;  %p851_p1 = scmp.lt.s32.totalorder %s32_s19, %s32_s19 }
   0x5   :  { %p847_p0 = scmp.ne.s32.totalorder %s32_s19, %s846_s20  ;;  %p852_p2 = scmp.lt.s32.totalorder %s846_s20, %s846_s20 }
   0x7   :  { %p853_p3 = por %p852_p2, %p851_p1 }
   0x9   :  { %p854_p4 = pnand %p853_p3, %p847_p0 }
   0xb   :  { %857 = shalt.err (!%p854_p4)
}
   0xc   :  { %s925_s21 = smov 128   ;;  %s926_s22 = smov 8  }
   0xd   :  { %37 = dma.hbm_to_vmem [thread:$0]  %s1177_s1, 512, %s32_s19, [#allocation7], %s925_s21, %s925_s21, %s926_s22  }
   0xe   :  { %s927_s25 = smov [#allocation3]  }
   0xf   :  { %s19_s26 = sshll.u32 %s927_s25, 4  ;;  %s20_s26 = int_to_ptr.vmem [resolvable:$true] %s19_s26 }
  0x10   :  { %s866_s27 = scalar_lea.vmem %s20_s26, 2048  ;;  %p871_p6 = scmp.lt.s32.totalorder %s20_s26, %s20_s26 }
  0x11   :  { %p867_p5 = scmp.ne.s32.totalorder %s20_s26, %s866_s27  ;;  %p872_p7 = scmp.lt.s32.totalorder %s866_s27, %s866_s27 }
  0x13   :  { %p873_p8 = por %p872_p7, %p871_p6 }
  0x15   :  { %p874_p9 = pnand %p873_p8, %p867_p5 }
  0x17   :  { %877 = shalt.err (!%p874_p9)
}
  0x18   :  { %s928_s28 = smov 256   ;;  %s929_s29 = smov 16  }
  0x19   :  { %25 = dma.hbm_to_vmem [thread:$0]  %s1176_s0, 2048, %s20_s26, [#allocation4], %s928_s28, %s928_s28, %s929_s29  }
  0x1a   :  { %s930_s1 = smov [#allocation8]  }
  0x1b   :  { %s45_s7 = sshll.u32 %s930_s1, 4  ;;  %s46_s7 = int_to_ptr.vmem [resolvable:$true] %s45_s7 }
  0x1c   :  { %s886_s8 = scalar_lea.vmem %s46_s7, 16384  ;;  %p891_p11 = scmp.lt.s32.totalorder %s46_s7, %s46_s7 }
  0x1d   :  { %p887_p10 = scmp.ne.s32.totalorder %s46_s7, %s886_s8  ;;  %p892_p12 = scmp.lt.s32.totalorder %s886_s8, %s886_s8 }
  0x1f   :  { %p893_p13 = por %p892_p12, %p891_p11 }
  0x21   :  { %p894_p0 = pnand %p893_p13, %p887_p10 }
  0x23   :  { %897 = shalt.err (!%p894_p0)
}
  0x24   :  { %51 = dma.hbm_to_vmem [thread:$0]  %s1179_s3, 16384, %s46_s7, [#allocation7], %s928_s28, %s928_s28, %s929_s29  }
  0x25   :  { %918 = dma.done.wait [#allocation4], 2048  }
  0x26   :  { %919 = vsyncadd [#allocation4], 4294965248 }
  0x27   :  { %920 = dma.done.wait [#allocation7], 16896  }
  0x28   :  { %921 = vsyncadd [#allocation7], 4294950400  ;;  %v980_v0 = vld [vmem:[#allocation3 + $0x40] sm:$0xff]  ;;  %v982_v1 = vld [vmem:[#allocation3 + $0x48] sm:$0xff]  ;;  %v931_v32 = vmov 0.0   ;;  %vm932_vm0 = vmmov 0   ;;  %v162_v43 = vlaneseq }
  0x29   :  { %v984_v2 = vld [vmem:[#allocation3] sm:$0xff]  ;;  %v115_v3 = vadd.f32 %v982_v1, %v980_v0  ;;  %v988_v4 = vld [vmem:[#allocation3 + $0x8] sm:$0xff]  ;;  %v990_v5 = vld [vmem:[#allocation3 + $0x50] sm:$0xff]  ;;  %v91_v21 = vmax.f32 %v980_v0, %v982_v1  ;;  %812 = vmatprep.subr.mxu0 %v931_v32  ;;  %820 = vmatprep.mubr.msk.f32.mxu0 %vm932_vm0, %v931_v32  ;;  %vm173_vm1 = vcmask 130112   ;;  %vm180_vm2 = vcmask 195712  }
  0x2a   :  { %v992_v6 = vld [vmem:[#allocation3 + $0x58] sm:$0xff]  ;;  %v103_v7 = vadd.f32 %v988_v4, %v984_v2  ;;  %v996_v8 = vld [vmem:[#allocation3 + $0x10] sm:$0xff]  ;;  %v1004_v12 = vld [vmem:[#allocation3 + $0x60] sm:$0xff]  ;;  %v79_v19 = vmax.f32 %v984_v2, %v988_v4  ;;  %v163_v46 = vand.u32 127, %v162_v43  ;;  %v1044_v49 = vshrl.u32 %v162_v43, 7 }
  0x2b   :  { %v998_v9 = vld [vmem:[#allocation3 + $0x18] sm:$0xff]  ;;  %116 = vadd.xlane.f32.xlu1 %v115_v3  ;;  %v118_v10 = vadd.f32 %v992_v6, %v990_v5  ;;  %v1006_v13 = vld [vmem:[#allocation3 + $0x68] sm:$0xff]  ;;  %v1008_v14 = vld [vmem:[#allocation3 + $0x20] sm:$0xff]  ;;  %v94_v20 = vmax.f32 %v990_v5, %v992_v6  ;;  %vm187_vm3 = vcmask 261312   ;;  %vm208_vm4 = vcmask 1041409  }
  0x2c   :  { %104 = vadd.xlane.f32.xlu0 %v103_v7  ;;  %v106_v11 = vadd.f32 %v998_v9, %v996_v8  ;;  %v1010_v15 = vld [vmem:[#allocation3 + $0x28] sm:$0xff]  ;;  %v121_v16 = vadd.f32 %v1006_v13, %v1004_v12  ;;  %v82_v18 = vmax.f32 %v996_v8, %v998_v9  ;;  %v1024_v22 = vld [vmem:[#allocation3 + $0x70] sm:$0xff]  ;;  %v1026_v23 = vld [vmem:[#allocation3 + $0x78] sm:$0xff]  ;;  %v97_v28 = vmax.f32 %v1004_v12, %v1006_v13 }
  0x2d   :  { %v109_v17 = vadd.f32 %v1010_v15, %v1008_v14  ;;  %v1028_v24 = vld [vmem:[#allocation3 + $0x30] sm:$0xff]  ;;  %v1030_v25 = vld [vmem:[#allocation3 + $0x38] sm:$0xff]  ;;  %v124_v26 = vadd.f32 %v1026_v23, %v1024_v22  ;;  %v85_v29 = vmax.f32 %v1008_v14, %v1010_v15  ;;  %v100_v30 = vmax.f32 %v1024_v22, %v1026_v23  ;;  %v144_v35 = vld [vmem:[#allocation6 + $0x8] sm:$0xff] }
  0x2e   :  { %v112_v27 = vadd.f32 %v1030_v25, %v1028_v24  ;;  %v88_v31 = vmax.f32 %v1028_v24, %v1030_v25  ;;  %v146_v33 = vld [vmem:[#allocation6 + $0x18] sm:$0xff]  ;;  %v145_v34 = vld [vmem:[#allocation6 + $0x10] sm:$0xff]  ;;  %v143_v36 = vld [vmem:[#allocation6] sm:$0xff]  ;;  %v168_v50 = vadd.s32 4294967288, %v163_v46  ;;  %v175_v52 = vadd.s32 4294967280, %v163_v46 }
  0x2f   :  { %119 = vadd.xlane.f32.xlu1 %v118_v10  ;;  %813 = vmatpush3.msra.mxu0 %v146_v33  ;;  %v166_v59 = vsub.s32 %v163_v46, %v1044_v49  ;;  %v182_v63 = vadd.s32 4294967272, %v163_v46  ;;  %vm210_vm5 = vcmask 261120   ;;  %v530_v46 = vld [vmem:[#allocation8 + $0x2f8] sm:$0xff] }
  0x30   :  { %107 = vadd.xlane.f32.xlu0 %v106_v11  ;;  %814 = vmatprep.subr.mxu0 %v931_v32  ;;  %v171_v58 = vsub.s32 %v168_v50, %v1044_v49  ;;  %v178_v11 = vsub.s32 %v175_v52, %v1044_v49  ;;  %v528_v50 = vld [vmem:[#allocation8 + $0x2e8] sm:$0xff]  ;;  %v527_v52 = vld [vmem:[#allocation8 + $0x2e0] sm:$0xff] }
  0x31   :  { %815 = vmatpush3.msra.mxu0 %v145_v34 }
  0x32   :  { %816 = vmatprep.subr.mxu0 %v931_v32 }
  0x33   :  { %122 = vadd.xlane.f32.xlu1 %v121_v16  ;;  %817 = vmatpush3.msra.mxu0 %v144_v35 }
  0x34   :  { %110 = vadd.xlane.f32.xlu0 %v109_v17  ;;  %818 = vmatprep.subr.mxu0 %v931_v32 }
  0x35   :  { %819 = vmatpush3.msra.mxu0 %v143_v36 }
  0x36   :  { %636 = vmatprep.subr.mxu0 %v530_v46  ;;  %v443_v46 = vld [vmem:[#allocation8 + $0x40] sm:$0xff] }
  0x37   :  { %83 = vmax.xlane.f32.xlu1 %v82_v18 }
  0x38   :  { %80 = vmax.xlane.f32.xlu0 %v79_v19 }
  0x3b   :  { %95 = vmax.xlane.f32.xlu1 %v94_v20 }
  0x3c   :  { %92 = vmax.xlane.f32.xlu0 %v91_v21 }
  0x3f   :  { %125 = vadd.xlane.f32.xlu1 %v124_v26 }
  0x40   :  { %113 = vadd.xlane.f32.xlu0 %v112_v27  ;;  %v185_v27 = vsub.s32 %v182_v63, %v1044_v49  ;;  %v522_v63 = vld [vmem:[#allocation8 + $0x2b8] sm:$0xff] }
  0x43   :  { %98 = vmax.xlane.f32.xlu1 %v97_v28 }
  0x44   :  { %86 = vmax.xlane.f32.xlu0 %v85_v29 }
  0x47   :  { %101 = vmax.xlane.f32.xlu1 %v100_v30 }
  0x48   :  { %89 = vmax.xlane.f32.xlu0 %v88_v31 }
  0xb4   :  { %v117_v37 = vpop.xlane.xlu1 %116 }
  0xb5   :  { %v105_v38 = vpop.xlane.xlu0 %104  ;;  %v131_v53 = vmul.f32 0.00390625, %v117_v37 }
  0xb6   :  { %v127_v56 = vmul.f32 0.00390625, %v105_v38 }
  0xb8   :  { %v120_v39 = vpop.xlane.xlu1 %119 }
  0xb9   :  { %v108_v40 = vpop.xlane.xlu0 %107  ;;  %v132_v54 = vmul.f32 0.00390625, %v120_v39 }
  0xba   :  { %v128_v57 = vmul.f32 0.00390625, %v108_v40 }
  0xbc   :  { %v123_v41 = vpop.xlane.xlu1 %122 }
  0xbd   :  { %v111_v42 = vpop.xlane.xlu0 %110  ;;  %v133_v60 = vmul.f32 0.00390625, %v123_v41 }
  0xbe   :  { %v129_v3 = vmul.f32 0.00390625, %v111_v42 }
  0xc0   :  { %v84_v44 = vpop.xlane.xlu1 %83 }
  0xc1   :  { %v81_v45 = vpop.xlane.xlu0 %80  ;;  %v136_v7 = vadd.f32 %v128_v57, %v84_v44  ;;  %v462_v57 = vld [vmem:[#allocation8 + $0xd8] sm:$0xff] }
  0xc2   :  { %v135_v10 = vadd.f32 %v127_v56, %v81_v45  ;;  %v525_v56 = vld [vmem:[#allocation8 + $0x2d0] sm:$0xff] }
  0xc3   :  { %v172_v28 = vrot.slane %v136_v7, %v171_v58  ;;  %v521_v7 = vld [vmem:[#allocation8 + $0x2b0] sm:$0xff] }
  0xc4   :  { %v96_v47 = vpop.xlane.xlu1 %95  ;;  %v167_v29 = vrot.slane %v135_v10, %v166_v59  ;;  %v457_v10 = vld [vmem:[#allocation8 + $0xb0] sm:$0xff] }
  0xc5   :  { %v93_v48 = vpop.xlane.xlu0 %92  ;;  %v140_v61 = vadd.f32 %v132_v54, %v96_v47  ;;  %v529_v47 = vld [vmem:[#allocation8 + $0x2f0] sm:$0xff]  ;;  %v526_v54 = vld [vmem:[#allocation8 + $0x2d8] sm:$0xff] }
  0xc6   :  { %v139_v62 = vadd.f32 %v131_v53, %v93_v48  ;;  %v174_v39 = vsel %vm173_vm1, %v172_v28, %v167_v29  ;;  %v466_v48 = vld [vmem:[#allocation8 + $0xf8] sm:$0xff]  ;;  %v464_v53 = vld [vmem:[#allocation8 + $0xe8] sm:$0xff]  ;;  %v515_v29 = vld [vmem:[#allocation8 + $0x280] sm:$0xff] }
  0xc7   :  { %v196_v20 = vrot.slane %v140_v61, %v171_v58  ;;  %565 = vmatprep.subr.mxu1 %v466_v48  ;;  %v524_v58 = vld [vmem:[#allocation8 + $0x2c8] sm:$0xff]  ;;  %v523_v61 = vld [vmem:[#allocation8 + $0x2c0] sm:$0xff]  ;;  %v442_v48 = vld [vmem:[#allocation8 + $0x38] sm:$0xff] }
  0xc8   :  { %v126_v51 = vpop.xlane.xlu1 %125  ;;  %v192_v21 = vrot.slane %v139_v62, %v166_v59  ;;  %v461_v59 = vld [vmem:[#allocation8 + $0xd0] sm:$0xff]  ;;  %v459_v62 = vld [vmem:[#allocation8 + $0xc0] sm:$0xff]  ;;  %v452_v28 = vld [vmem:[#allocation8 + $0x88] sm:$0xff] }
  0xc9   :  { %v114_v55 = vpop.xlane.xlu0 %113  ;;  %v134_v26 = vmul.f32 0.00390625, %v126_v51  ;;  %v465_v51 = vld [vmem:[#allocation8 + $0xf0] sm:$0xff] }
  0xca   :  { %v130_v30 = vmul.f32 0.00390625, %v114_v55  ;;  %v197_v37 = vsel %vm173_vm1, %v196_v20, %v192_v21  ;;  %566 = vmatpush1.msra.mxu1 %v465_v51  ;;  %v463_v55 = vld [vmem:[#allocation8 + $0xe0] sm:$0xff]  ;;  %v454_v20 = vld [vmem:[#allocation8 + $0x98] sm:$0xff]  ;;  %v517_v21 = vld [vmem:[#allocation8 + $0x290] sm:$0xff] }
  0xcb   :  { %567 = vmatprep.subr.mxu1 %v464_v53  ;;  %v441_v51 = vld [vmem:[#allocation8 + $0x30] sm:$0xff]  ;;  %v440_v53 = vld [vmem:[#allocation8 + $0x28] sm:$0xff] }
  0xcc   :  { %v99_v16 = vpop.xlane.xlu1 %98  ;;  %568 = vmatpush1.msra.mxu1 %v463_v55  ;;  %v439_v55 = vld [vmem:[#allocation8 + $0x20] sm:$0xff] }
  0xcd   :  { %v141_v17 = vadd.f32 %v133_v60, %v99_v16  ;;  %v87_v18 = vpop.xlane.xlu0 %86  ;;  %v460_v60 = vld [vmem:[#allocation8 + $0xc8] sm:$0xff]  ;;  %569 = vmatprep.subr.mxu1 %v462_v57  ;;  %v501_v57 = vld [vmem:[#allocation8 + $0x210] sm:$0xff] }
  0xce   :  { %v137_v19 = vadd.f32 %v129_v3, %v87_v18  ;;  %570 = vmatpush1.msra.mxu1 %v461_v59  ;;  %v458_v3 = vld [vmem:[#allocation8 + $0xb8] sm:$0xff]  ;;  %v456_v16 = vld [vmem:[#allocation8 + $0xa8] sm:$0xff]  ;;  %v455_v18 = vld [vmem:[#allocation8 + $0xa0] sm:$0xff] }
  0xcf   :  { %v201_v31 = vrot.slane %v141_v17, %v178_v11  ;;  %571 = vmatprep.subr.mxu1 %v460_v60  ;;  %v519_v17 = vld [vmem:[#allocation8 + $0x2a0] sm:$0xff] }
  0xd0   :  { %v102_v32 = vpop.xlane.xlu1 %101  ;;  %v179_v33 = vrot.slane %v137_v19, %v178_v11  ;;  %572 = vmatpush1.msra.mxu1 %v459_v62  ;;  %v520_v11 = vld [vmem:[#allocation8 + $0x2a8] sm:$0xff]  ;;  %v518_v19 = vld [vmem:[#allocation8 + $0x298] sm:$0xff] }
  0xd1   :  { %v142_v34 = vadd.f32 %v134_v26, %v102_v32  ;;  %v90_v35 = vpop.xlane.xlu0 %89  ;;  %v202_v40 = vsel %vm180_vm2, %v201_v31, %v197_v37  ;;  %573 = vmatprep.subr.mxu1 %v458_v3  ;;  %v453_v26 = vld [vmem:[#allocation8 + $0x90] sm:$0xff]  ;;  %v514_v31 = vld [vmem:[#allocation8 + $0x278] sm:$0xff]  ;;  %v511_v37 = vld [vmem:[#allocation8 + $0x260] sm:$0xff] }
  0xd2   :  { %v138_v36 = vadd.f32 %v130_v30, %v90_v35  ;;  %v181_v42 = vsel %vm180_vm2, %v179_v33, %v174_v39  ;;  %574 = vmatpush1.msra.mxu1 %v457_v10  ;;  %v451_v30 = vld [vmem:[#allocation8 + $0x80] sm:$0xff]  ;;  %v450_v32 = vld [vmem:[#allocation8 + $0x78] sm:$0xff]  ;;  %v513_v33 = vld [vmem:[#allocation8 + $0x270] sm:$0xff] }
  0xd3   :  { %v206_v38 = vrot.slane %v142_v34, %v185_v27  ;;  %575 = vmatprep.subr.mxu1 %v456_v16  ;;  %v449_v34 = vld [vmem:[#allocation8 + $0x70] sm:$0xff]  ;;  %v512_v35 = vld [vmem:[#allocation8 + $0x268] sm:$0xff]  ;;  %v510_v39 = vld [vmem:[#allocation8 + $0x258] sm:$0xff] }
  0xd4   :  { %v186_v41 = vrot.slane %v138_v36, %v185_v27  ;;  %576 = vmatpush1.msra.mxu1 %v455_v18  ;;  %v516_v27 = vld [vmem:[#allocation8 + $0x288] sm:$0xff]  ;;  %v499_v16 = vld [vmem:[#allocation8 + $0x200] sm:$0xff]  ;;  %v562_v18 = vld [vmem:[#allocation8 + $0x3f8] sm:$0xff] }
  0xd5   :  { %v207_v43 = vsel %vm187_vm3, %v206_v38, %v202_v40  ;;  %577 = vmatprep.subr.mxu1 %v454_v20  ;;  %v448_v36 = vld [vmem:[#allocation8 + $0x68] sm:$0xff]  ;;  %v447_v38 = vld [vmem:[#allocation8 + $0x60] sm:$0xff]  ;;  %v446_v40 = vld [vmem:[#allocation8 + $0x58] sm:$0xff] }
  0xd6   :  { %v188_v44 = vsel %vm187_vm3, %v186_v41, %v181_v42  ;;  %578 = vmatpush1.msra.mxu1 %v453_v26  ;;  %v509_v41 = vld [vmem:[#allocation8 + $0x250] sm:$0xff]  ;;  %v500_v10 = vld [vmem:[#allocation8 + $0x208] sm:$0xff] }
  0xd7   :  { %v209_v45 = vsel %vm208_vm4, %v207_v43, %v188_v44  ;;  %579 = vmatprep.subr.mxu1 %v452_v28  ;;  %v445_v42 = vld [vmem:[#allocation8 + $0x50] sm:$0xff]  ;;  %v508_v43 = vld [vmem:[#allocation8 + $0x248] sm:$0xff]  ;;  %v559_v28 = vld [vmem:[#allocation8 + $0x3e0] sm:$0xff] }
  0xd8   :  { %821 = vmatmul.mubr.msk.f32.vlgmr.msra.gmra.mxu0 %vm210_vm5, %v209_v45  ;;  %580 = vmatpush1.msra.mxu1 %v451_v30  ;;  %v444_v44 = vld [vmem:[#allocation8 + $0x48] sm:$0xff]  ;;  %v507_v45 = vld [vmem:[#allocation8 + $0x240] sm:$0xff]  ;;  %v561_v20 = vld [vmem:[#allocation8 + $0x3f0] sm:$0xff] }
  0xd9   :  { %637 = vmatpush1.msra.mxu0 %v529_v47  ;;  %581 = vmatprep.subr.mxu1 %v450_v32  ;;  %v506_v47 = vld [vmem:[#allocation8 + $0x238] sm:$0xff]  ;;  %v560_v26 = vld [vmem:[#allocation8 + $0x3e8] sm:$0xff]  ;;  %v557_v32 = vld [vmem:[#allocation8 + $0x3d0] sm:$0xff] }
  0xda   :  { %638 = vmatprep.subr.mxu0 %v528_v50  ;;  %582 = vmatpush1.msra.mxu1 %v449_v34  ;;  %v505_v50 = vld [vmem:[#allocation8 + $0x230] sm:$0xff]  ;;  %v558_v30 = vld [vmem:[#allocation8 + $0x3d8] sm:$0xff] }
  0xdb   :  { %639 = vmatpush1.msra.mxu0 %v527_v52  ;;  %583 = vmatprep.subr.mxu1 %v448_v36  ;;  %v504_v52 = vld [vmem:[#allocation8 + $0x228] sm:$0xff]  ;;  %v494_v34 = vld [vmem:[#allocation8 + $0x1d8] sm:$0xff]  ;;  %v493_v36 = vld [vmem:[#allocation8 + $0x1d0] sm:$0xff] }
  0xdc   :  { %640 = vmatprep.subr.mxu0 %v526_v54  ;;  %584 = vmatpush1.msra.mxu1 %v447_v38  ;;  %v503_v54 = vld [vmem:[#allocation8 + $0x220] sm:$0xff] }
  0xdd   :  { %641 = vmatpush1.msra.mxu0 %v525_v56  ;;  %585 = vmatprep.subr.mxu1 %v446_v40  ;;  %v502_v56 = vld [vmem:[#allocation8 + $0x218] sm:$0xff] }
  0xde   :  { %642 = vmatprep.subr.mxu0 %v524_v58  ;;  %586 = vmatpush1.msra.mxu1 %v445_v42  ;;  %v804_v58 = vld [vmem:[%s1178_s2] ss:$0 sm:$0xff]  ;;  %v554_v40 = vld [vmem:[#allocation8 + $0x3b8] sm:$0xff]  ;;  %v1059_v42 = vsub.s32 1, %v1044_v49 }
  0xdf   :  { %643 = vmatpush1.msra.mxu0 %v523_v61  ;;  %587 = vmatprep.subr.mxu1 %v444_v44  ;;  %v553_v44 = vld [vmem:[#allocation8 + $0x3b0] sm:$0xff] }
  0xe0   :  { %644 = vmatprep.subr.mxu0 %v522_v63  ;;  %588 = vmatpush1.msra.mxu1 %v443_v46  ;;  %v552_v46 = vld [vmem:[#allocation8 + $0x3a8] sm:$0xff] }
  0xe1   :  { %645 = vmatpush1.msra.mxu0 %v521_v7  ;;  %589 = vmatprep.subr.mxu1 %v442_v48  ;;  %v438_v7 = vld [vmem:[#allocation8 + $0x18] sm:$0xff]  ;;  %v551_v48 = vld [vmem:[#allocation8 + $0x3a0] sm:$0xff] }
  0xe2   :  { %646 = vmatprep.subr.mxu0 %v520_v11  ;;  %590 = vmatpush1.msra.mxu1 %v441_v51  ;;  %v437_v11 = vld [vmem:[#allocation8 + $0x10] sm:$0xff]  ;;  %v550_v51 = vld [vmem:[#allocation8 + $0x398] sm:$0xff] }
  0xe3   :  { %647 = vmatpush1.msra.mxu0 %v519_v17  ;;  %591 = vmatprep.subr.mxu1 %v440_v53  ;;  %v436_v17 = vld [vmem:[#allocation8 + $0x8] sm:$0xff]  ;;  %v487_v53 = vld [vmem:[#allocation8 + $0x1a0] sm:$0xff] }
  0xe4   :  { %648 = vmatprep.subr.mxu0 %v518_v19  ;;  %592 = vmatpush1.msra.mxu1 %v439_v55  ;;  %v435_v19 = vld [vmem:[#allocation8] sm:$0xff]  ;;  %v486_v55 = vld [vmem:[#allocation8 + $0x198] sm:$0xff] }
  0xe5   :  { %649 = vmatpush1.msra.mxu0 %v517_v21  ;;  %593 = vmatprep.subr.mxu1 %v438_v7  ;;  %v498_v21 = vld [vmem:[#allocation8 + $0x1f8] sm:$0xff]  ;;  %v481_v7 = vld [vmem:[#allocation8 + $0x170] sm:$0xff] }
  0xe6   :  { %650 = vmatprep.subr.mxu0 %v516_v27  ;;  %594 = vmatpush1.msra.mxu1 %v437_v11  ;;  %v497_v27 = vld [vmem:[#allocation8 + $0x1f0] sm:$0xff]  ;;  %v480_v11 = vld [vmem:[#allocation8 + $0x168] sm:$0xff] }
  0xe7   :  { %651 = vmatpush1.msra.mxu0 %v515_v29  ;;  %595 = vmatprep.subr.mxu1 %v436_v17  ;;  %v496_v29 = vld [vmem:[#allocation8 + $0x1e8] sm:$0xff]  ;;  %v479_v17 = vld [vmem:[#allocation8 + $0x160] sm:$0xff] }
  0xe8   :  { %652 = vmatprep.subr.mxu0 %v514_v31  ;;  %596 = vmatpush1.msra.mxu1 %v435_v19  ;;  %v495_v31 = vld [vmem:[#allocation8 + $0x1e0] sm:$0xff]  ;;  %v478_v19 = vld [vmem:[#allocation8 + $0x158] sm:$0xff] }
  0xe9   :  { %653 = vmatpush1.msra.mxu0 %v513_v33  ;;  %597 = vmatprep.subr.mxu1 %v498_v21  ;;  %v1055_v33 = vsub.s32 0, %v1044_v49  ;;  %v477_v21 = vld [vmem:[#allocation8 + $0x150] sm:$0xff] }
  0xea   :  { %654 = vmatprep.subr.mxu0 %v512_v35  ;;  %598 = vmatpush2.msra.mxu1 %v497_v27  ;;  %v556_v35 = vld [vmem:[#allocation8 + $0x3c8] sm:$0xff] }
  0xeb   :  { %655 = vmatpush1.msra.mxu0 %v511_v37  ;;  %599 = vmatprep.subr.mxu1 %v496_v29  ;;  %v555_v37 = vld [vmem:[#allocation8 + $0x3c0] sm:$0xff]  ;;  %v476_v27 = vld [vmem:[#allocation8 + $0x148] sm:$0xff] }
  0xec   :  { %656 = vmatprep.subr.mxu0 %v510_v39  ;;  %600 = vmatpush2.msra.mxu1 %v495_v31  ;;  %v492_v39 = vld [vmem:[#allocation8 + $0x1c8] sm:$0xff]  ;;  %v475_v29 = vld [vmem:[#allocation8 + $0x140] sm:$0xff]  ;;  %v474_v31 = vld [vmem:[#allocation8 + $0x138] sm:$0xff] }
  0xed   :  { %657 = vmatpush1.msra.mxu0 %v509_v41  ;;  %601 = vmatprep.subr.mxu1 %v494_v34  ;;  %v473_v34 = vld [vmem:[#allocation8 + $0x130] sm:$0xff] }
  0xee   :  { %658 = vmatprep.subr.mxu0 %v508_v43  ;;  %602 = vmatpush2.msra.mxu1 %v493_v36  ;;  %v491_v43 = vld [vmem:[#allocation8 + $0x1c0] sm:$0xff]  ;;  %v472_v36 = vld [vmem:[#allocation8 + $0x128] sm:$0xff] }
  0xef   :  { %659 = vmatpush1.msra.mxu0 %v507_v45  ;;  %603 = vmatprep.subr.mxu1 %v492_v39  ;;  %v490_v45 = vld [vmem:[#allocation8 + $0x1b8] sm:$0xff]  ;;  %v533_v39 = vld [vmem:[#allocation8 + $0x310] sm:$0xff] }
  0xf0   :  { %660 = vmatprep.subr.mxu0 %v506_v47  ;;  %604 = vmatpush2.msra.mxu1 %v491_v43  ;;  %v489_v47 = vld [vmem:[#allocation8 + $0x1b0] sm:$0xff] }
  0xf1   :  { %661 = vmatpush1.msra.mxu0 %v505_v50  ;;  %605 = vmatprep.subr.mxu1 %v490_v45  ;;  %v488_v50 = vld [vmem:[#allocation8 + $0x1a8] sm:$0xff]  ;;  %v469_v43 = vld [vmem:[#allocation8 + $0x110] sm:$0xff] }
  0xf2   :  { %662 = vmatprep.subr.mxu0 %v504_v52  ;;  %606 = vmatpush2.msra.mxu1 %v489_v47  ;;  %v468_v45 = vld [vmem:[#allocation8 + $0x108] sm:$0xff] }
  0xf3   :  { %663 = vmatpush1.msra.mxu0 %v503_v54  ;;  %v549_v54 = vld [vmem:[#allocation8 + $0x390] sm:$0xff]  ;;  %607 = vmatprep.subr.mxu1 %v488_v50 }
  0xf4   :  { %664 = vmatprep.subr.mxu0 %v502_v56  ;;  %v548_v56 = vld [vmem:[#allocation8 + $0x388] sm:$0xff]  ;;  %608 = vmatpush2.msra.mxu1 %v487_v53 }
  0xf5   :  { %665 = vmatpush1.msra.mxu0 %v501_v57  ;;  %v485_v57 = vld [vmem:[#allocation8 + $0x190] sm:$0xff]  ;;  %609 = vmatprep.subr.mxu1 %v486_v55 }
  0xf6   :  { %666 = vmatprep.subr.mxu0 %v500_v10  ;;  %610 = vmatpush2.msra.mxu1 %v485_v57  ;;  %v543_v10 = vld [vmem:[#allocation8 + $0x360] sm:$0xff] }
  0xf7   :  { %667 = vmatpush1.msra.mxu0 %v499_v16  ;;  %v542_v16 = vld [vmem:[#allocation8 + $0x358] sm:$0xff] }
  0xf8   :  { %668 = vmatprep.subr.mxu0 %v562_v18  ;;  %v541_v18 = vld [vmem:[#allocation8 + $0x350] sm:$0xff] }
  0xf9   :  { %669 = vmatpush2.msra.mxu0 %v561_v20  ;;  %v540_v20 = vld [vmem:[#allocation8 + $0x348] sm:$0xff] }
  0xfa   :  { %670 = vmatprep.subr.mxu0 %v560_v26  ;;  %v539_v26 = vld [vmem:[#allocation8 + $0x340] sm:$0xff] }
  0xfb   :  { %671 = vmatpush2.msra.mxu0 %v559_v28  ;;  %v538_v28 = vld [vmem:[#allocation8 + $0x338] sm:$0xff] }
  0xfc   :  { %672 = vmatprep.subr.mxu0 %v558_v30  ;;  %v537_v30 = vld [vmem:[#allocation8 + $0x330] sm:$0xff] }
  0xfd   :  { %673 = vmatpush2.msra.mxu0 %v557_v32  ;;  %v536_v32 = vld [vmem:[#allocation8 + $0x328] sm:$0xff] }
  0xfe   :  { %674 = vmatprep.subr.mxu0 %v556_v35  ;;  %v535_v35 = vld [vmem:[#allocation8 + $0x320] sm:$0xff] }
  0xff   :  { %675 = vmatpush2.msra.mxu0 %v555_v37  ;;  %v534_v37 = vld [vmem:[#allocation8 + $0x318] sm:$0xff] }
 0x100   :  { %676 = vmatprep.subr.mxu0 %v554_v40  ;;  %v470_v40 = vld [vmem:[#allocation8 + $0x118] sm:$0xff] }
 0x101   :  { %677 = vmatpush2.msra.mxu0 %v553_v44  ;;  %v531_v44 = vld [vmem:[#allocation8 + $0x300] sm:$0xff] }
 0x102   :  { %678 = vmatprep.subr.mxu0 %v552_v46  ;;  %v467_v46 = vld [vmem:[#allocation8 + $0x100] sm:$0xff] }
 0x103   :  { %679 = vmatpush2.msra.mxu0 %v551_v48 }
 0x104   :  { %680 = vmatprep.subr.mxu0 %v550_v51 }
 0x105   :  { %681 = vmatpush2.msra.mxu0 %v549_v54 }
 0x106   :  { %682 = vmatprep.subr.mxu0 %v548_v56 }
 0x198   :  { %v279_v59 = vpop.f32.mrf.mxu0 }
 0x199   :  { %v280_v60 = vadd.f32 %v804_v58, %v279_v59  ;;  %v547_v58 = vld [vmem:[#allocation8 + $0x380] sm:$0xff]  ;;  %v484_v59 = vld [vmem:[#allocation8 + $0x188] sm:$0xff] }
 0x19a   :  { %v822_v61 = vpop.f32.mrf.mxu0  ;;  %683 = vmatpush2.msra.mxu0 %v547_v58  ;;  %611 = vmatprep.subr.mxu1 %v484_v59 }
 0x19b   :  { %v806_v62 = vmul.f32 -1.442695, %v280_v60  ;;  %v546_v60 = vld [vmem:[#allocation8 + $0x378] sm:$0xff]  ;;  %v483_v61 = vld [vmem:[#allocation8 + $0x180] sm:$0xff] }
 0x19c   :  { %684 = vmatprep.subr.mxu0 %v546_v60  ;;  %612 = vmatpush2.msra.mxu1 %v483_v61 }
 0x19d   :  { %834 = vpow2.f32 %v806_v62  ;;  %v545_v62 = vld [vmem:[#allocation8 + $0x370] sm:$0xff] }
 0x19e   :  { %685 = vmatpush2.msra.mxu0 %v545_v62 }
 0x1aa   :  { %v835_v63 = vpop.eup %834 }
 0x1ab   :  { %v286_v3 = vadd.f32 1.0, %v835_v63  ;;  %v482_v63 = vld [vmem:[#allocation8 + $0x178] sm:$0xff] }
 0x1ac   :  { %613 = vmatprep.subr.mxu1 %v482_v63 }
 0x1ad   :  { %836 = vrcp.f32 %v286_v3  ;;  %v544_v3 = vld [vmem:[#allocation8 + $0x368] sm:$0xff]  ;;  %614 = vmatpush2.msra.mxu1 %v481_v7 }
 0x1ae   :  { %686 = vmatprep.subr.mxu0 %v544_v3  ;;  %615 = vmatprep.subr.mxu1 %v480_v11 }
 0x1af   :  { %687 = vmatpush2.msra.mxu0 %v543_v10  ;;  %616 = vmatpush2.msra.mxu1 %v479_v17 }
 0x1b0   :  { %688 = vmatprep.subr.mxu0 %v542_v16  ;;  %617 = vmatprep.subr.mxu1 %v478_v19 }
 0x1b1   :  { %689 = vmatpush2.msra.mxu0 %v541_v18  ;;  %618 = vmatpush2.msra.mxu1 %v477_v21 }
 0x1b2   :  { %690 = vmatprep.subr.mxu0 %v540_v20  ;;  %619 = vmatprep.subr.mxu1 %v476_v27 }
 0x1b3   :  { %691 = vmatpush2.msra.mxu0 %v539_v26  ;;  %620 = vmatpush2.msra.mxu1 %v475_v29 }
 0x1b4   :  { %692 = vmatprep.subr.mxu0 %v538_v28  ;;  %621 = vmatprep.subr.mxu1 %v474_v31 }
 0x1b5   :  { %693 = vmatpush2.msra.mxu0 %v537_v30  ;;  %622 = vmatpush2.msra.mxu1 %v473_v34 }
 0x1b6   :  { %694 = vmatprep.subr.mxu0 %v536_v32  ;;  %623 = vmatprep.subr.mxu1 %v472_v36 }
 0x1b7   :  { %695 = vmatpush2.msra.mxu0 %v535_v35 }
 0x1b8   :  { %696 = vmatprep.subr.mxu0 %v534_v37 }
 0x1b9   :  { %697 = vmatpush2.msra.mxu0 %v533_v39 }
 0x1ba   :  { %v837_v38 = vpop.eup %836 }
 0x1bb   :  { %v292_v41 = vrot.slane %v837_v38, %v1055_v33  ;;  %v311_v52 = vrot.slane %v837_v38, %v1059_v42  ;;  %v471_v38 = vld [vmem:[#allocation8 + $0x120] sm:$0xff] }
 0x1bc   :  { %624 = vmatpush2.msra.mxu1 %v471_v38 }
 0x1bd   :  { %298 = vbcast.lane.b32.xlu1 %v292_v41, 264  ;;  %294 = vbcast.lane.b32.xlu0 %v292_v41, 256 }
 0x1be   :  { %625 = vmatprep.subr.mxu1 %v470_v40 }
 0x1bf   :  { %626 = vmatpush2.msra.mxu1 %v469_v43 }
 0x1c0   :  { %627 = vmatprep.subr.mxu1 %v468_v45 }
 0x1c1   :  { %313 = vbcast.lane.b32.xlu1 %v311_v52, 256  ;;  %302 = vbcast.lane.b32.xlu0 %v292_v41, 272 }
 0x1c2   :  { %628 = vmatpush2.msra.mxu1 %v467_v46 }
 0x1c5   :  { %317 = vbcast.lane.b32.xlu1 %v311_v52, 264  ;;  %306 = vbcast.lane.b32.xlu0 %v292_v41, 280  ;;  %v532_v41 = vld [vmem:[#allocation8 + $0x308] sm:$0xff] }
 0x1c6   :  { %698 = vmatprep.subr.mxu0 %v532_v41 }
 0x1c7   :  { %699 = vmatpush2.msra.mxu0 %v531_v44 }
 0x1c9   :  { %321 = vbcast.lane.b32.xlu1 %v311_v52, 272 }
 0x1cd   :  { %325 = vbcast.lane.b32.xlu1 %v311_v52, 280 }
 0x22f   :  { %v299_v47 = vpop.permute.xlu1 %298  ;;  %v295_v48 = vpop.permute.xlu0 %294 }
 0x230   :  { %v1063_v50 = vmul.f32 %v299_v47, %v996_v8  ;;  %v1066_v51 = vmul.f32 %v299_v47, %v998_v9  ;;  %v1069_v52 = vmul.f32 %v295_v48, %v984_v2  ;;  %v1072_v53 = vmul.f32 %v295_v48, %v988_v4 }
 0x232   :  { %v343_v8 = vmax.f32 %v1069_v52, %v1063_v50  ;;  %v352_v9 = vmax.f32 %v1072_v53, %v1066_v51  ;;  %v379_v2 = vadd.f32 %v1063_v50, %v1069_v52  ;;  %v388_v4 = vadd.f32 %v1066_v51, %v1072_v53 }
 0x233   :  { %v314_v54 = vpop.permute.xlu1 %313  ;;  %v303_v55 = vpop.permute.xlu0 %302 }
 0x234   :  { %v1075_v56 = vmul.f32 %v303_v55, %v1008_v14  ;;  %v1078_v57 = vmul.f32 %v303_v55, %v1010_v15 }
 0x236   :  { %v344_v62 = vmax.f32 %v343_v8, %v1075_v56  ;;  %v353_v63 = vmax.f32 %v352_v9, %v1078_v57  ;;  %v380_v3 = vadd.f32 %v379_v2, %v1075_v56  ;;  %v389_v7 = vadd.f32 %v388_v4, %v1078_v57 }
 0x237   :  { %v318_v58 = vpop.permute.xlu1 %317  ;;  %v307_v59 = vpop.permute.xlu0 %306 }
 0x238   :  { %v1089_v14 = vmul.f32 %v318_v58, %v990_v5  ;;  %v1092_v15 = vmul.f32 %v318_v58, %v992_v6  ;;  %v1095_v60 = vmul.f32 %v307_v59, %v1028_v24  ;;  %v1098_v61 = vmul.f32 %v307_v59, %v1030_v25 }
 0x239   :  { %v1105_v5 = vmul.f32 %v314_v54, %v980_v0  ;;  %v1108_v6 = vmul.f32 %v314_v54, %v982_v1 }
 0x23a   :  { %v345_v24 = vmax.f32 %v344_v62, %v1095_v60  ;;  %v354_v10 = vmax.f32 %v353_v63, %v1098_v61  ;;  %v381_v25 = vadd.f32 %v380_v3, %v1095_v60  ;;  %v390_v11 = vadd.f32 %v389_v7, %v1098_v61 }
 0x23b   :  { %v322_v16 = vpop.permute.xlu1 %321  ;;  %v361_v17 = vmax.f32 %v1105_v5, %v1089_v14  ;;  %v370_v18 = vmax.f32 %v1108_v6, %v1092_v15  ;;  %v397_v27 = vadd.f32 %v1089_v14, %v1105_v5  ;;  %v406_v28 = vadd.f32 %v1092_v15, %v1108_v6 }
 0x23c   :  { %v1119_v0 = vmul.f32 %v322_v16, %v1004_v12  ;;  %v1122_v1 = vmul.f32 %v322_v16, %v1006_v13  ;;  %v346_v19 = vrot.slane %v345_v24, 4  ;;  %v355_v20 = vrot.slane %v354_v10, 4 }
 0x23d   :  { %v382_v21 = vrot.slane %v381_v25, 4  ;;  %v391_v26 = vrot.slane %v390_v11, 4 }
 0x23e   :  { %v362_v29 = vmax.f32 %v361_v17, %v1119_v0  ;;  %v371_v30 = vmax.f32 %v370_v18, %v1122_v1  ;;  %v347_v31 = vmax.f32 %v345_v24, %v346_v19  ;;  %v356_v12 = vmax.f32 %v354_v10, %v355_v20 }
 0x23f   :  { %v383_v32 = vadd.f32 %v382_v21, %v381_v25  ;;  %v392_v34 = vadd.f32 %v391_v26, %v390_v11  ;;  %v326_v13 = vpop.permute.xlu1 %325  ;;  %v398_v35 = vadd.f32 %v397_v27, %v1119_v0  ;;  %v407_v36 = vadd.f32 %v406_v28, %v1122_v1 }
 0x240   :  { %v1133_v37 = vmul.f32 %v326_v13, %v1024_v22  ;;  %v1136_v38 = vmul.f32 %v326_v13, %v1026_v23  ;;  %v348_v39 = vrot.slane %v347_v31, 2  ;;  %v357_v40 = vrot.slane %v356_v12, 2 }
 0x241   :  { %v384_v41 = vrot.slane %v383_v32, 2  ;;  %v393_v43 = vrot.slane %v392_v34, 2 }
 0x242   :  { %v363_v44 = vmax.f32 %v362_v29, %v1133_v37  ;;  %v372_v45 = vmax.f32 %v371_v30, %v1136_v38  ;;  %v399_v46 = vadd.f32 %v398_v35, %v1133_v37  ;;  %v408_v47 = vadd.f32 %v407_v36, %v1136_v38 }
 0x243   :  { %v394_v48 = vadd.f32 %v393_v43, %v392_v34  ;;  %v385_v54 = vadd.f32 %v384_v41, %v383_v32  ;;  %v349_v23 = vmax.f32 %v347_v31, %v348_v39  ;;  %v358_v2 = vmax.f32 %v356_v12, %v357_v40 }
 0x244   :  { %v364_v55 = vrot.slane %v363_v44, 4  ;;  %v373_v22 = vrot.slane %v372_v45, 4  ;;  %v400_v8 = vrot.slane %v399_v46, 4  ;;  %v409_v9 = vrot.slane %v408_v47, 4 }
 0x245   :  { %v395_v63 = vrot.slane %v394_v48, 1  ;;  %v386_v3 = vrot.slane %v385_v54, 1  ;;  %v359_v11 = vrot.slane %v358_v2, 1  ;;  %v350_v16 = vrot.slane %v349_v23, 1 }
 0x246   :  { %v365_v4 = vmax.f32 %v363_v44, %v364_v55  ;;  %v374_v58 = vmax.f32 %v372_v45, %v373_v22  ;;  %v401_v59 = vadd.f32 %v400_v8, %v399_v46  ;;  %v410_v62 = vadd.f32 %v409_v9, %v408_v47 }
 0x247   :  { %v396_v21 = vadd.f32 %v395_v63, %v394_v48  ;;  %v387_v26 = vadd.f32 %v386_v3, %v385_v54  ;;  %v360_v31 = vmax.f32 %v358_v2, %v359_v11  ;;  %v351_v12 = vmax.f32 %v349_v23, %v350_v16 }
 0x248   :  { %v366_v7 = vrot.slane %v365_v4, 2  ;;  %v375_v24 = vrot.slane %v374_v58, 2  ;;  %v402_v10 = vrot.slane %v401_v59, 2  ;;  %v411_v25 = vrot.slane %v410_v62, 2 }
 0x249   :  { %v416_v36 = vmul.f32 0.03125, %v396_v21  ;;  %v415_v39 = vmul.f32 0.03125, %v387_v26  ;;  %v564_v47 = vstv %s1180_s4  ;;  %v933_v48 = vmov 1966171168   ;;  %s934_s4 = smov [#allocation9]  }
 0x24a   :  { %v367_v17 = vmax.f32 %v365_v4, %v366_v7  ;;  %v376_v18 = vmax.f32 %v374_v58, %v375_v24  ;;  %v412_v19 = vadd.f32 %v411_v25, %v410_v62  ;;  %v403_v20 = vadd.f32 %v402_v10, %v401_v59  ;;  %s791_s12 = sshll.u32 %s934_s4, 4  ;;  %s792_s12 = int_to_ptr.vmem [resolvable:$true] %s791_s12 }
 0x24b   :  { %v713_v54 = vunpack.c.l.s4 %v933_v48  ;;  %s898_s13 = scalar_lea.vmem %s792_s12, 2048  ;;  %p903_p2 = scmp.lt.s32.totalorder %s792_s12, %s792_s12 }
 0x24c   :  { %v377_v27 = vrot.slane %v376_v18, 1  ;;  %v368_v28 = vrot.slane %v367_v17, 1  ;;  %v413_v29 = vrot.slane %v412_v19, 1  ;;  %v404_v30 = vrot.slane %v403_v20, 1  ;;  %p899_p1 = scmp.ne.s32.totalorder %s792_s12, %s898_s13  ;;  %p904_p3 = scmp.lt.s32.totalorder %s898_s13, %s898_s13 }
 0x24d   :  { %v714_v4 = vunpack.c.0.s8 %v713_v54 }
 0x24e   :  { %v378_v32 = vmax.f32 %v376_v18, %v377_v27  ;;  %v369_v34 = vmax.f32 %v367_v17, %v368_v28  ;;  %v414_v13 = vadd.f32 %v413_v29, %v412_v19  ;;  %v405_v35 = vadd.f32 %v404_v30, %v403_v20  ;;  %p905_p4 = por %p904_p3, %p903_p2 }
 0x24f   :  { %v717_v3 = vsub.s32 %v714_v4, %v1044_v49 }
 0x250   :  { %v432_v40 = vsel %vm208_vm4, %v378_v32, %v360_v31  ;;  %v431_v41 = vsel %vm208_vm4, %v369_v34, %v351_v12  ;;  %v418_v43 = vmul.f32 0.03125, %v414_v13  ;;  %v417_v44 = vmul.f32 0.03125, %v405_v35  ;;  %p906_p5 = pnand %p905_p4, %p899_p1 }
 0x251   :  { %700 = vmatprep.mubr.f32.mxu0 %v432_v40 }
 0x252   :  { %701 = vmatmul.mubr.f32.vlgmr.msra.gmra.mxu0 %v431_v41  ;;  %v424_v45 = vsel %vm208_vm4, %v418_v43, %v416_v36  ;;  %v423_v46 = vsel %vm208_vm4, %v417_v44, %v415_v39 }
 0x253   :  { %629 = vmatprep.mubr.f32.mxu1 %v424_v45 }
 0x254   :  { %630 = vmatmul.mubr.f32.vlgmr.msra.gmra.mxu1 %v423_v46 }
 0x312   :  { %v702_v55 = vpop.f32.mrf.mxu0 }
 0x314   :  { %v631_v22 = vpop.f32.mrf.mxu1  ;;  %v704_v58 = vpop.f32.mrf.mxu0 }
 0x315   :  { %v632_v8 = vadd.f32 %v631_v22, %v564_v47 }
 0x316   :  { %v633_v9 = vpop.f32.mrf.mxu1 }
 0x317   :  { %v703_v23 = vadd.f32 %v702_v55, %v632_v8  ;;  %v634_v2 = vadd.f32 %v633_v9, %v564_v47 }
 0x319   :  { %v705_v59 = vadd.f32 %v704_v58, %v634_v2  ;;  %v707_v62 = vmax.f32 %v703_v23, 0.0 }
 0x31b   :  { %v708_v63 = vmax.f32 %v705_v59, 0.0 }
 0x31d   :  { %v711_v7 = vcombine.low %v707_v62, %v708_v63 }
 0x31f   :  { %v718_v24 = vrot.slane %v711_v7, %v717_v3 }
 0x321   :  { %v719_v10 = vcombine.high %v718_v24, %v718_v24  ;;  %v726_v25 = vrot.slane %v718_v24, %v717_v3 }
 0x323   :  { %v733_v11 = vrot.slane %v719_v10, %v717_v3  ;;  %v737_v16 = vrot.slane %v726_v25, %v1055_v33  ;;  %v741_v17 = vrot.slane %v726_v25, %v1059_v42 }
 0x325   :  { %v745_v18 = vrot.slane %v733_v11, %v1055_v33  ;;  %v749_v19 = vrot.slane %v733_v11, %v1059_v42  ;;  %v754_v20 = vmul.f32 %v737_v16, %v1069_v52  ;;  %v755_v21 = vmul.f32 %v741_v17, %v1072_v53 }
 0x326   :  { %v756_v26 = vmul.f32 %v737_v16, %v1063_v50  ;;  %v757_v49 = vmul.f32 %v741_v17, %v1066_v51  ;;  %v758_v27 = vmul.f32 %v737_v16, %v1075_v56  ;;  %v759_v28 = vmul.f32 %v741_v17, %v1078_v57 }
 0x327   :  { %v760_v29 = vmul.f32 %v737_v16, %v1095_v60  ;;  %v761_v33 = vmul.f32 %v741_v17, %v1098_v61  ;;  %v762_v42 = vmul.f32 %v745_v18, %v1105_v5  ;;  %v763_v52 = vmul.f32 %v749_v19, %v1108_v6  ;;  %770 = vst [vmem:[#allocation9] sm:$0xff] %v754_v20 }
 0x328   :  { %771 = vst [vmem:[#allocation9 + $0x8] sm:$0xff] %v755_v21  ;;  %v764_v50 = vmul.f32 %v745_v18, %v1089_v14  ;;  %v765_v51 = vmul.f32 %v749_v19, %v1092_v15  ;;  %v766_v53 = vmul.f32 %v745_v18, %v1119_v0  ;;  %v767_v56 = vmul.f32 %v749_v19, %v1122_v1 }
 0x329   :  { %772 = vst [vmem:[#allocation9 + $0x10] sm:$0xff] %v756_v26  ;;  %773 = vst [vmem:[#allocation9 + $0x18] sm:$0xff] %v757_v49  ;;  %v768_v57 = vmul.f32 %v745_v18, %v1133_v37  ;;  %v769_v60 = vmul.f32 %v749_v19, %v1136_v38 }
 0x32a   :  { %774 = vst [vmem:[#allocation9 + $0x20] sm:$0xff] %v758_v27  ;;  %775 = vst [vmem:[#allocation9 + $0x28] sm:$0xff] %v759_v28 }
 0x32b   :  { %776 = vst [vmem:[#allocation9 + $0x30] sm:$0xff] %v760_v29  ;;  %777 = vst [vmem:[#allocation9 + $0x38] sm:$0xff] %v761_v33 }
 0x32c   :  { %778 = vst [vmem:[#allocation9 + $0x40] sm:$0xff] %v762_v42  ;;  %779 = vst [vmem:[#allocation9 + $0x48] sm:$0xff] %v763_v52 }
 0x32d   :  { %780 = vst [vmem:[#allocation9 + $0x50] sm:$0xff] %v764_v50  ;;  %781 = vst [vmem:[#allocation9 + $0x58] sm:$0xff] %v765_v51 }
 0x32e   :  { %782 = vst [vmem:[#allocation9 + $0x60] sm:$0xff] %v766_v53  ;;  %783 = vst [vmem:[#allocation9 + $0x68] sm:$0xff] %v767_v56 }
 0x32f   :  { %784 = vst [vmem:[#allocation9 + $0x70] sm:$0xff] %v768_v57  ;;  %785 = vst [vmem:[#allocation9 + $0x78] sm:$0xff] %v769_v60 }
 0x330   :  { %909 = shalt.err (!%p906_p5)
}
 0x331   :  { %797 = dma.vmem_to_hbm [thread:$0]  %s792_s12, 2048, %s1181_s5, [#allocation5], %s928_s28, %s928_s28, %s929_s29  }
 0x332   :  { %922 = dma.done.wait [#allocation5], 2048  }
 0x333   :  { %923 = vsyncadd [#allocation5], 4294965248 }
 0x334   :  { %801 = vsyncpa [#allocation4], 1 }
 0x335   :  { %802 = vsyncpa [#allocation7], 1 }
 0x336   :  { %803 = vsyncpa [#allocation5], 1 }

</bundles_post_ra>
